<compile_context>
chip_gen: v5e
topology: v5e:2x2
jax: 0.10.0
libtpu: 0.0.40
codegen_flags: <defaults>
</compile_context>

<pallas_src>
import jax
import jax.numpy as jnp
import numpy as np
from jax import lax
from jax.experimental import pallas as pl
from jax.experimental.pallas import tpu as pltpu


PACK = 8  # output pixels packed per 128-lane output row (128 // 16 channels)


def _round_up(x, m):
    return ((x + m - 1) // m) * m


def _num_tensorcores():
    """Best-effort TensorCores-per-chip (v7x: 2, v5e/v6e: 1). Defensive."""
    for getter in (lambda: pltpu.get_tpu_info(), lambda: jax.devices()[0]):
        try:
            obj = getter()
        except Exception:
            continue
        for name in ("num_cores", "core_count", "cores_per_chip",
                     "num_tensorcores"):
            try:
                v = int(getattr(obj, name))
            except Exception:
                continue
            if v > 0:
                return min(v, 2)
    return 1


def _fused_conv_kernel(a_ref, w1_ref, b1_ref, w2_ref, b2_ref, o_ref):
    # a_ref : (TP, 600)  bf16, 8 im2col pixel-rows (75 each) packed per row
    # w1_ref: (600, 48)  bf16, 8-way block-diagonal conv1-as-matmul weight
    # b1_ref: (1, 48)    f32, conv1 bias tiled x8
    # w2_ref: (48, 128)  f32, 8-way block-diagonal 1x1-conv weight
    # b2_ref: (1, 128)   f32, conv_next bias tiled x8
    # o_ref : (TP, 128)  f32, lane-dense: 8 pixels x 16 REAL channels per row
    h = jnp.dot(a_ref[...], w1_ref[...], preferred_element_type=jnp.float32)
    h = jnp.clip(h + b1_ref[...], 0.0, 6.0)                     # bias + ReLU6
    y = jnp.dot(h, w2_ref[...], preferred_element_type=jnp.float32) + b2_ref[...]
    # sigmoid via the EUP tanh path (no VPU divide, no exp overflow); every
    # output lane is real data now, so no wasted transcendental work.
    o_ref[...] = 0.5 * jnp.tanh(0.5 * y) + 0.5


def model_forward(x_nchw, params, *, tile_prows=256):
    """Pallas version of sigmoid(conv_1x1_pad1(relu6(conv_5x5_s2_p1(x))))."""
    w1, b1, w2, b2 = params        # torch layouts: w1 (C1,Cin,5,5), w2 (C2,C1,1,1)
    N, Cin, H, W = x_nchw.shape
    KH = KW = 5
    S, P = 2, 1
    C1 = w1.shape[0]
    C2 = w2.shape[0]
    assert PACK * C2 == 128, "packing assumes 16 output channels"
    H1 = (H + 2 * P - KH) // S + 1
    W1 = (W + 2 * P - KW) // S + 1
    H2, W2 = H1 + 2, W1 + 2        # conv_next: 1x1, stride 1, padding 1
    K1 = KH * KW * Cin

    # ---- glue: NCHW -> NHWC bf16, zero-pad, im2col (built once in bf16) ----
    x = jnp.transpose(x_nchw, (0, 2, 3, 1)).astype(jnp.bfloat16)
    xp = jnp.pad(x, ((0, 0), (P, P), (P, P), (0, 0)))
    cols = []
    for kh in range(KH):
        rows_kh = xp[:, kh:kh + S * H1:S]                   # (N, H1, Wp, Cin)
        for kw in range(KW):
            cols.append(rows_kh[:, :, kw:kw + S * W1:S, :])
    patches = jnp.concatenate(cols, axis=-1)                # (N, H1, W1, 75)
    M = N * H1 * W1

    # pack 8 consecutive output pixels per row: (M, 75) -> (M/8, 600) bf16
    Mp = _round_up(M, PACK)
    A = jnp.pad(patches.reshape(M, K1), ((0, Mp - M), (0, 0)))
    A = A.reshape(Mp // PACK, PACK * K1)
    Prow = Mp // PACK

    # matmul-ready weights; 8-way block-diagonal so the packed layout carries
    # through both dots (no in-kernel reshapes, lane-dense output).
    w1m = jnp.transpose(w1, (2, 3, 1, 0)).reshape(K1, C1).astype(jnp.float32)
    w2m = w2.reshape(C2, C1).T.astype(jnp.float32)          # (C1, C2)
    eye = jnp.eye(PACK, dtype=jnp.float32)
    w1bd = jnp.einsum('ij,kc->ikjc', eye, w1m)
    w1bd = w1bd.reshape(PACK * K1, PACK * C1).astype(jnp.bfloat16)
    w2bd = jnp.einsum('ij,kc->ikjc', eye, w2m).reshape(PACK * C1, PACK * C2)
    b1p = jnp.tile(b1.reshape(1, C1).astype(jnp.float32), (1, PACK))
    b2p = jnp.tile(b2.reshape(1, C2).astype(jnp.float32), (1, PACK))

    # ---- tiling: big tiles (0.35us/step amortization); only split for >=2
    # "parallel" steps when the chip actually has >1 TensorCore (v7x). ----
    n_tc = _num_tensorcores()
    tp = min(tile_prows, _round_up(Prow, 16))
    if n_tc > 1:
        tp = min(tp, max(16, _round_up(pl.cdiv(Prow, n_tc), 16)))
    Pp = _round_up(Prow, tp)
    A = jnp.pad(A, ((0, Pp - Prow), (0, 0)))
    grid = (Pp // tp,)

    K1p, C1p, C2p = PACK * K1, PACK * C1, PACK * C2
    cost = pl.CostEstimate(
        flops=2 * Pp * (K1p * C1p + C1p * C2p),
        transcendentals=Pp * C2p,
        bytes_accessed=(Pp * K1p * 2 + K1p * C1p * 2 + C1p * C2p * 4
                        + (C1p + C2p) * 4 + Pp * C2p * 4),
    )

    out_rows = pl.pallas_call(
        _fused_conv_kernel,
        out_shape=jax.ShapeDtypeStruct((Pp, C2p), jnp.float32),
        grid_spec=pltpu.PrefetchScalarGridSpec(
            num_scalar_prefetch=0,
            grid=grid,
            in_specs=[
                pl.BlockSpec((tp, K1p), lambda i: (i, 0)),
                pl.BlockSpec((K1p, C1p), lambda i: (0, 0)),
                pl.BlockSpec((1, C1p), lambda i: (0, 0)),
                pl.BlockSpec((C1p, C2p), lambda i: (0, 0)),
                pl.BlockSpec((1, C2p), lambda i: (0, 0)),
            ],
            out_specs=pl.BlockSpec((tp, C2p), lambda i: (i, 0)),
        ),
        compiler_params=pltpu.CompilerParams(
            dimension_semantics=("parallel",)),
        cost_estimate=cost,
    )(A, w1bd, b1p, w2bd, b2p)

    # ---- glue: unpack, place interior into the (H1+2,W1+2) conv_next output
    # (border pixels only see zero padding -> sigmoid(b2)), back to NCHW. ----
    interior = out_rows.reshape(Pp * PACK, C2)[:M].reshape(N, H1, W1, C2)
    border = jax.nn.sigmoid(b2.astype(jnp.float32)).reshape(1, 1, 1, C2)
    full = jnp.broadcast_to(border, (N, H2, W2, C2))
    full = full.at[:, 1:1 + H1, 1:1 + W1, :].set(interior)
    out = jnp.transpose(full, (0, 3, 1, 2))                 # NCHW (N,16,H2,W2)

    # TODO(synk): the original PyTorch forward ends with `x = x * x1`, a
    # broadcast between (N,16,H2,W2) and (N,3,H,W) that raises for every input
    # shape in PyTorch, so it is omitted (we return the sigmoid output).
    return out


def reference_forward(x, w1, b1, w2, b2):
    """Plain-JAX f32 reference matching the PyTorch module up to the sigmoid."""
    dn = ('NCHW', 'OIHW', 'NCHW')
    y = lax.conv_general_dilated(x, w1, (2, 2), [(1, 1), (1, 1)],
                                 dimension_numbers=dn)
    y = y + b1[None, :, None, None]
    y = jnp.clip(y, 0.0, 6.0)
    y = lax.conv_general_dilated(y, w2, (1, 1), [(1, 1), (1, 1)],
                                 dimension_numbers=dn)
    y = y + b2[None, :, None, None]
    return jax.nn.sigmoid(y)


if __name__ == "__main__":
    key = jax.random.PRNGKey(0)
    k1, k2, k3, k4, k5 = jax.random.split(key, 5)

    # small shapes consistent with the module (Cin must be 3, C2 must be 16)
    N, Cin, H, W = 2, 3, 16, 16
    C1, C2 = 6, 16

    x1 = jax.random.normal(k1, (N, Cin, H, W), dtype=jnp.float32)
    w1 = jax.random.normal(k2, (C1, Cin, 5, 5), dtype=jnp.float32) * 0.15
    b1 = jax.random.normal(k3, (C1,), dtype=jnp.float32) * 0.1
    w2 = jax.random.normal(k4, (C2, C1, 1, 1), dtype=jnp.float32) * 0.3
    b2 = jax.random.normal(k5, (C2,), dtype=jnp.float32) * 0.1

    fwd = jax.jit(model_forward)
    out = jax.block_until_ready(fwd(x1, (w1, b1, w2, b2)))

    ref = reference_forward(x1, w1, b1, w2, b2)
    # conv1 operands are bf16 (deliberate accuracy/bandwidth tradeoff);
    # compare against the f32 reference at a bf16-appropriate tolerance.
    np.testing.assert_allclose(np.asarray(out), np.asarray(ref),
                               atol=5e-3, rtol=5e-3)
    print("KERNEL_OK")
</pallas_src>

<mosaic_0001>
module attributes {stable_mosaic.version = 11 : i64} {
  func.func @_fused_conv_kernel(%arg0: i32, %arg1: memref<16x600xbf16, #tpu.memory_space<vmem>>, %arg2: memref<600x48xbf16, #tpu.memory_space<vmem>>, %arg3: memref<1x48xf32, #tpu.memory_space<vmem>>, %arg4: memref<48x128xf32, #tpu.memory_space<vmem>>, %arg5: memref<1x128xf32, #tpu.memory_space<vmem>>, %arg6: memref<16x128xf32, #tpu.memory_space<vmem>>) attributes {dimension_semantics = [#tpu.dimension_semantics<parallel>], iteration_bounds = array<i64: 1>, scalar_prefetch = 0 : i64, scratch_operands = 0 : i64, tpu.core_type = #tpu.core_type<tc>, window_params = [{transform_indices = @transform_0, window_bounds = array<i64: 16, 600>}, {pipeline_mode = #tpu.pipeline_mode<synchronous>, transform_indices = @transform_1, window_bounds = array<i64: 600, 48>}, {pipeline_mode = #tpu.pipeline_mode<synchronous>, transform_indices = @transform_2, window_bounds = array<i64: 1, 48>}, {pipeline_mode = #tpu.pipeline_mode<synchronous>, transform_indices = @transform_3, window_bounds = array<i64: 48, 128>}, {pipeline_mode = #tpu.pipeline_mode<synchronous>, transform_indices = @transform_4, window_bounds = array<i64: 1, 128>}, {transform_indices = @transform_5, window_bounds = array<i64: 16, 128>}]} {
    %c0 = arith.constant 0 : index
    %c0_0 = arith.constant 0 : index
    %0 = vector.load %arg1[%c0, %c0_0] : memref<16x600xbf16, #tpu.memory_space<vmem>>, vector<16x600xbf16>
    %c0_1 = arith.constant 0 : index
    %c0_2 = arith.constant 0 : index
    %1 = vector.load %arg2[%c0_1, %c0_2] : memref<600x48xbf16, #tpu.memory_space<vmem>>, vector<600x48xbf16>
    %cst = arith.constant dense<0.000000e+00> : vector<16x48xf32>
    %2 = tpu.matmul %0, %1, %cst {dimension_numbers = #tpu.dot_dimension_numbers<[1], [0], [0], [1], [0, 0, 1, 1], [], []>} : vector<16x600xbf16>, vector<600x48xbf16>, vector<16x48xf32> -> vector<16x48xf32>
    %c0_3 = arith.constant 0 : index
    %c0_4 = arith.constant 0 : index
    %3 = vector.load %arg3[%c0_3, %c0_4] : memref<1x48xf32, #tpu.memory_space<vmem>>, vector<1x48xf32>
    %4 = vector.broadcast %3 : vector<1x48xf32> to vector<16x48xf32>
    %5 = arith.addf %2, %4 : vector<16x48xf32>
    %cst_5 = arith.constant 0.000000e+00 : f32
    %cst_6 = arith.constant 6.000000e+00 : f32
    %6 = vector.broadcast %cst_5 : f32 to vector<16x48xf32>
    %7 = arith.maximumf %6, %5 : vector<16x48xf32>
    %8 = vector.broadcast %cst_6 : f32 to vector<16x48xf32>
    %9 = arith.minimumf %8, %7 : vector<16x48xf32>
    %c0_7 = arith.constant 0 : index
    %c0_8 = arith.constant 0 : index
    %10 = vector.load %arg4[%c0_7, %c0_8] : memref<48x128xf32, #tpu.memory_space<vmem>>, vector<48x128xf32>
    %cst_9 = arith.constant dense<0.000000e+00> : vector<16x128xf32>
    %11 = tpu.matmul %9, %10, %cst_9 {dimension_numbers = #tpu.dot_dimension_numbers<[1], [0], [0], [1], [0, 0, 1, 1], [], []>} : vector<16x48xf32>, vector<48x128xf32>, vector<16x128xf32> -> vector<16x128xf32>
    %c0_10 = arith.constant 0 : index
    %c0_11 = arith.constant 0 : index
    %12 = vector.load %arg5[%c0_10, %c0_11] : memref<1x128xf32, #tpu.memory_space<vmem>>, vector<1x128xf32>
    %13 = vector.broadcast %12 : vector<1x128xf32> to vector<16x128xf32>
    %14 = arith.addf %11, %13 : vector<16x128xf32>
    %cst_12 = arith.constant 5.000000e-01 : f32
    %15 = vector.broadcast %cst_12 : f32 to vector<16x128xf32>
    %16 = arith.mulf %15, %14 : vector<16x128xf32>
    %17 = math.tanh %16 : vector<16x128xf32>
    %cst_13 = arith.constant 5.000000e-01 : f32
    %18 = vector.broadcast %cst_13 : f32 to vector<16x128xf32>
    %19 = arith.mulf %18, %17 : vector<16x128xf32>
    %cst_14 = arith.constant 5.000000e-01 : f32
    %20 = vector.broadcast %cst_14 : f32 to vector<16x128xf32>
    %21 = arith.addf %19, %20 : vector<16x128xf32>
    %c0_15 = arith.constant 0 : index
    %c0_16 = arith.constant 0 : index
    %22 = vector.load %arg6[%c0_15, %c0_16] : memref<16x128xf32, #tpu.memory_space<vmem>>, vector<16x128xf32>
    tpu.vector_store %arg6[%c0_15, %c0_16], %21 {strides = array<i32>} : memref<16x128xf32, #tpu.memory_space<vmem>>, vector<16x128xf32>,
    return
  }
  func.func @transform_0(%arg0: i32) -> (i32, i32) {
    %c0_i32 = arith.constant 0 : i32
    %c0_i32_0 = arith.constant 0 : i32
    return %arg0, %c0_i32 : i32, i32
  }
  func.func @transform_1(%arg0: i32) -> (i32, i32) {
    %c0_i32 = arith.constant 0 : i32
    %c0_i32_0 = arith.constant 0 : i32
    %c0_i32_1 = arith.constant 0 : i32
    return %c0_i32, %c0_i32_0 : i32, i32
  }
  func.func @transform_2(%arg0: i32) -> (i32, i32) {
    %c0_i32 = arith.constant 0 : i32
    %c0_i32_0 = arith.constant 0 : i32
    %c0_i32_1 = arith.constant 0 : i32
    return %c0_i32, %c0_i32_0 : i32, i32
  }
  func.func @transform_3(%arg0: i32) -> (i32, i32) {
    %c0_i32 = arith.constant 0 : i32
    %c0_i32_0 = arith.constant 0 : i32
    %c0_i32_1 = arith.constant 0 : i32
    return %c0_i32, %c0_i32_0 : i32, i32
  }
  func.func @transform_4(%arg0: i32) -> (i32, i32) {
    %c0_i32 = arith.constant 0 : i32
    %c0_i32_0 = arith.constant 0 : i32
    %c0_i32_1 = arith.constant 0 : i32
    return %c0_i32, %c0_i32_0 : i32, i32
  }
  func.func @transform_5(%arg0: i32) -> (i32, i32) {
    %c0_i32 = arith.constant 0 : i32
    %c0_i32_0 = arith.constant 0 : i32
    return %arg0, %c0_i32 : i32, i32
  }
}

</mosaic_0001>

<bundles_post_ra>
// kernel: model_forward.1
= control target key start
LH: loop header
LB: loop body
LE: loop exit
PB: predicated region body
PF: predicated region fallthrough
CT: control target
= control target key end

     0   :  { %vm360_vm0 = vcmask 1043456   ;;  %vm356_vm1 = vcmask 719872   ;;  %vm448_vm2 = vcmask 392192   ;;  %s915_s1 = inlined_call_operand.vmem [shape: bf16[600,48], index: 1, kind: input, shape index: {}]   ;;  %s916_s2 = inlined_call_operand.vmem [shape: f32[1,48], index: 2, kind: input, shape index: {}]   ;;  %s917_s0 = inlined_call_operand.vmem [shape: bf16[16,600], index: 0, kind: input, shape index: {}]   ;;  %s918_s4 = inlined_call_operand.vmem [shape: f32[1,128], index: 4, kind: input, shape index: {}]   ;;  %s919_s3 = inlined_call_operand.vmem [shape: f32[48,128], index: 3, kind: input, shape index: {}]   ;;  %s920_s5 = inlined_call_operand.vmem [shape: f32[16,128], index: 5, kind: output, shape index: {}]  }
   0x1   :  { %v675_v0 = vld [vmem:[%s915_s1 + $0x38] sm:$0xff]  ;;  %v674_v4 = vld [vmem:[%s915_s1 + $0x30] sm:$0xff]  ;;  %v673_v8 = vld [vmem:[%s915_s1 + $0x28] sm:$0xff] }
   0x2   :  { %v691_v1 = vld [vmem:[%s915_s1 + $0xb8] sm:$0xff]  ;;  %364 = vmatpush.bf16.msra.mxu0 %v675_v0  ;;  %v690_v5 = vld [vmem:[%s915_s1 + $0xb0] sm:$0xff]  ;;  %v689_v9 = vld [vmem:[%s915_s1 + $0xa8] sm:$0xff] }
   0x3   :  { %v683_v2 = vld [vmem:[%s915_s1 + $0x78] sm:$0xff]  ;;  %392 = vmatpush.bf16.msra.mxu2 %v691_v1  ;;  %v682_v6 = vld [vmem:[%s915_s1 + $0x70] sm:$0xff]  ;;  %v681_v10 = vld [vmem:[%s915_s1 + $0x68] sm:$0xff] }
   0x4   :  { %v699_v3 = vld [vmem:[%s915_s1 + $0xf8] sm:$0xff]  ;;  %378 = vmatpush.bf16.msra.mxu1 %v683_v2  ;;  %v698_v7 = vld [vmem:[%s915_s1 + $0xf0] sm:$0xff]  ;;  %v697_v11 = vld [vmem:[%s915_s1 + $0xe8] sm:$0xff] }
   0x5   :  { %406 = vmatpush.bf16.msra.mxu3 %v699_v3  ;;  %v672_v12 = vld [vmem:[%s915_s1 + $0x20] sm:$0xff]  ;;  %v671_v16 = vld [vmem:[%s915_s1 + $0x18] sm:$0xff]  ;;  %v101_v20 = vld [vmem:[%s915_s1 + $0x128] sm:$0xf] }
   0x6   :  { %365 = vmatpush.bf16.msra.mxu0 %v674_v4  ;;  %v688_v13 = vld [vmem:[%s915_s1 + $0xa0] sm:$0xff]  ;;  %v687_v17 = vld [vmem:[%s915_s1 + $0x98] sm:$0xff]  ;;  %v670_v21 = vld [vmem:[%s915_s1 + $0x10] sm:$0xff]  ;;  %v280_v25 = vunpack.c.l.b16 %v101_v20 }
   0x7   :  { %393 = vmatpush.bf16.msra.mxu2 %v690_v5  ;;  %v680_v14 = vld [vmem:[%s915_s1 + $0x60] sm:$0xff]  ;;  %v679_v18 = vld [vmem:[%s915_s1 + $0x58] sm:$0xff]  ;;  %v686_v22 = vld [vmem:[%s915_s1 + $0x90] sm:$0xff] }
   0x8   :  { %379 = vmatpush.bf16.msra.mxu1 %v682_v6  ;;  %v696_v15 = vld [vmem:[%s915_s1 + $0xe0] sm:$0xff]  ;;  %v695_v19 = vld [vmem:[%s915_s1 + $0xd8] sm:$0xff]  ;;  %v678_v23 = vld [vmem:[%s915_s1 + $0x50] sm:$0xff]  ;;  %v318_v30 = vpack.c.b16 %v280_v25, %v280_v25 }
   0x9   :  { %407 = vmatpush.bf16.msra.mxu3 %v698_v7  ;;  %v694_v24 = vld [vmem:[%s915_s1 + $0xd0] sm:$0xff]  ;;  %v669_v26 = vld [vmem:[%s915_s1 + $0x8] sm:$0xff]  ;;  %v668_v31 = vld [vmem:[%s915_s1] sm:$0xff] }
   0xa   :  { %366 = vmatpush.bf16.msra.mxu0 %v673_v8  ;;  %v685_v27 = vld [vmem:[%s915_s1 + $0x88] sm:$0xff]  ;;  %v684_v32 = vld [vmem:[%s915_s1 + $0x80] sm:$0xff]  ;;  %v665_v34 = vld [vmem:[%s917_s0 + $0x10] sm:$0xf0]  ;;  %v362_v40 = vsel %vm360_vm0, %v318_v30, 0 }
   0xb   :  { %394 = vmatpush.bf16.msra.mxu2 %v689_v9  ;;  %v677_v28 = vld [vmem:[%s915_s1 + $0x48] sm:$0xff]  ;;  %v494_v33 = vld [vmem:[%s917_s0] sm:$0xf]  ;;  %v666_v36 = vld [vmem:[%s917_s0 + $0x18] sm:$0xf0] }
   0xc   :  { %380 = vmatpush.bf16.msra.mxu1 %v681_v10  ;;  %v693_v29 = vld [vmem:[%s915_s1 + $0xc8] sm:$0xff]  ;;  %v676_v37 = vld [vmem:[%s915_s1 + $0x40] sm:$0xff]  ;;  %v496_v39 = vld [vmem:[%s917_s0 + $0x14] sm:$0xf0]  ;;  %v495_v44 = vor.u32 %v665_v34, %v494_v33 }
   0xd   :  { %408 = vmatpush.bf16.msra.mxu3 %v697_v11  ;;  %v502_v35 = vld [vmem:[%s917_s0 + $0x8] sm:$0xf]  ;;  %v663_v38 = vld [vmem:[%s917_s0 + $0x4] sm:$0xf]  ;;  %v664_v42 = vld [vmem:[%s917_s0 + $0xc] sm:$0xf] }
   0xe   :  { %367 = vmatpush.bf16.msra.mxu0 %v672_v12  ;;  %v692_v41 = vld [vmem:[%s915_s1 + $0xc0] sm:$0xff]  ;;  %v503_v45 = vor.u32 %v666_v36, %v502_v35  ;;  %v499_v46 = vor.u32 %v663_v38, %v496_v39  ;;  %v703_v49 = vld [vmem:[%s915_s1 + $0x118] sm:$0xff]  ;;  %v702_v50 = vld [vmem:[%s915_s1 + $0x110] sm:$0xff] }
   0xf   :  { %395 = vmatpush.bf16.msra.mxu2 %v688_v13  ;;  %v504_v43 = vld [vmem:[%s917_s0 + $0x1c] sm:$0xf0]  ;;  %v701_v51 = vld [vmem:[%s915_s1 + $0x108] sm:$0xff]  ;;  %v510_v53 = vld [vmem:[%s917_s0 + $0x10] sm:$0xf] }
  0x10   :  { %381 = vmatpush.bf16.msra.mxu1 %v680_v14  ;;  %v507_v47 = vor.u32 %v664_v42, %v504_v43  ;;  %v704_v48 = vld [vmem:[%s915_s1 + $0x120] sm:$0xff]  ;;  %v443_v56 = vld [vmem:[%s919_s3 + $0x28] sm:$0xff]  ;;  %v441_v58 = vld [vmem:[%s919_s3 + $0x18] sm:$0xff] }
  0x11   :  { %409 = vmatpush.bf16.msra.mxu3 %v696_v15  ;;  %v700_v52 = vld [vmem:[%s915_s1 + $0x100] sm:$0xff]  ;;  %v440_v59 = vld [vmem:[%s919_s3 + $0x10] sm:$0xff]  ;;  %v439_v60 = vld [vmem:[%s919_s3 + $0x8] sm:$0xff] }
  0x12   :  { %368 = vmatpush.bf16.msra.mxu0 %v671_v16  ;;  %v667_v54 = vld [vmem:[%s917_s0 + $0x20] sm:$0xf0]  ;;  %v705_v63 = vld [vmem:[%s916_s2] ss:$0 sm:$0xff] }
  0x13   :  { %396 = vmatpush.bf16.msra.mxu2 %v687_v17  ;;  %v511_v55 = vor.u32 %v667_v54, %v510_v53  ;;  %v442_v57 = vld [vmem:[%s919_s3 + $0x20] sm:$0xff] }
  0x14   :  { %382 = vmatpush.bf16.msra.mxu1 %v679_v18  ;;  %v438_v61 = vld [vmem:[%s919_s3] sm:$0xff] }
  0x15   :  { %410 = vmatpush.bf16.msra.mxu3 %v695_v19 }
  0x16   :  { %369 = vmatpush.bf16.msra.mxu0 %v670_v21 }
  0x17   :  { %397 = vmatpush.bf16.msra.mxu2 %v686_v22 }
  0x18   :  { %383 = vmatpush.bf16.msra.mxu1 %v678_v23  ;;  %v706_v23 = vld [vmem:[%s918_s4] ss:$0 sm:$0xff] }
  0x19   :  { %411 = vmatpush.bf16.msra.mxu3 %v694_v24 }
  0x1a   :  { %370 = vmatpush.bf16.msra.mxu0 %v669_v26 }
  0x1b   :  { %398 = vmatpush.bf16.msra.mxu2 %v685_v27 }
  0x1c   :  { %384 = vmatpush.bf16.msra.mxu1 %v677_v28 }
  0x1d   :  { %412 = vmatpush.bf16.msra.mxu3 %v693_v29 }
  0x1e   :  { %371 = vmatpush.bf16.msra.mxu0 %v668_v31 }
  0x1f   :  { %399 = vmatpush.bf16.msra.mxu2 %v684_v32 }
  0x20   :  { %385 = vmatpush.bf16.msra.mxu1 %v676_v37 }
  0x21   :  { %413 = vmatpush.bf16.msra.mxu3 %v692_v41  ;;  %372 = vmatmul.bf16.vlgmr.msra.gmra.mxu0 %v495_v44 }
  0x22   :  { %422 = vmatpush.bf16.msrb.mxu0 %v362_v40  ;;  %400 = vmatmul.bf16.vlgmr.msra.gmra.mxu2 %v503_v45 }
  0x23   :  { %386 = vmatmul.bf16.vlgmr.msra.gmra.mxu1 %v499_v46 }
  0x24   :  { %414 = vmatmul.bf16.vlgmr.msra.gmra.mxu3 %v507_v47  ;;  %465 = vmatpush.msrb.mxu1 %v443_v56 }
  0x26   :  { %423 = vmatpush.bf16.msrb.mxu0 %v704_v48  ;;  %466 = vmatpush.msrb.mxu1 %v442_v57 }
  0x28   :  { %467 = vmatpush.msrb.mxu1 %v441_v58 }
  0x2a   :  { %424 = vmatpush.bf16.msrb.mxu0 %v703_v49  ;;  %468 = vmatpush.msrb.mxu1 %v440_v59 }
  0x2c   :  { %469 = vmatpush.msrb.mxu1 %v439_v60 }
  0x2e   :  { %425 = vmatpush.bf16.msrb.mxu0 %v702_v50  ;;  %470 = vmatpush.msrb.mxu1 %v438_v61 }
  0x32   :  { %426 = vmatpush.bf16.msrb.mxu0 %v701_v51 }
  0x36   :  { %427 = vmatpush.bf16.msrb.mxu0 %v700_v52 }
  0x39   :  { %660 = vmatmul.msk.bf16.vlgmr.msrb.gmra.mxu0 %vm356_vm1, %v511_v55 }
  0x9e   :  { %v373_v62 = vpop.f32.mrf.mxu0 }
  0x9f   :  { %v374_v0 = vadd.f32 %v705_v63, %v373_v62 }
  0xa0   :  { %v387_v1 = vpop.f32.mrf.mxu1 }
  0xa1   :  { %v388_v3 = vadd.f32 %v387_v1, %v374_v0 }
  0xa5   :  { %v401_v2 = vpop.f32.mrf.mxu2 }
  0xa6   :  { %v375_v4 = vpop.f32.mrf.mxu0  ;;  %v402_v6 = vadd.f32 %v401_v2, %v388_v3 }
  0xa7   :  { %v415_v5 = vpop.f32.mrf.mxu3  ;;  %v376_v7 = vadd.f32 %v705_v63, %v375_v4 }
  0xa8   :  { %v389_v8 = vpop.f32.mrf.mxu1  ;;  %v416_v9 = vadd.f32 %v415_v5, %v402_v6 }
  0xa9   :  { %v390_v12 = vadd.f32 %v389_v8, %v376_v7 }
  0xad   :  { %v403_v10 = vpop.f32.mrf.mxu2 }
  0xae   :  { %v404_v14 = vadd.f32 %v403_v10, %v390_v12 }
  0xaf   :  { %v417_v16 = vpop.f32.mrf.mxu3 }
  0xb0   :  { %v418_v18 = vadd.f32 %v417_v16, %v404_v14 }
  0xb6   :  { %v429_v11 = vpop.f32.mrf.mxu0 }
  0xb7   :  { %v430_v13 = vadd.f32 %v429_v11, %v416_v9 }
  0xb9   :  { %v434_v15 = vmax.f32 %v430_v13, 0.0 }
  0xbb   :  { %v436_v17 = vmin.f32 %v434_v15, 6.0 }
  0xbd   :  { %661 = vmatmul.msk.f32.vlgmr.msrb.gmra.mxu1 %vm448_vm2, %v436_v17 }
  0xbe   :  { %v431_v19 = vpop.f32.mrf.mxu0 }
  0xbf   :  { %v432_v20 = vadd.f32 %v431_v19, %v418_v18 }
  0xc1   :  { %v435_v21 = vmax.f32 %v432_v20, 0.0 }
  0xc3   :  { %v437_v22 = vmin.f32 %v435_v21, 6.0 }
  0xc5   :  { %662 = vmatmul.msk.f32.gmra.mxu1 %vm448_vm2, %v437_v22 }
 0x13a   :  { %v472_v24 = vpop.f32.mrf.mxu1 }
 0x13b   :  { %v473_v25 = vadd.f32 %v706_v23, %v472_v24 }
 0x13d   :  { %v478_v26 = vmul.f32 0.5, %v473_v25 }
 0x13f   :  { %707 = vtanh.f32 %v478_v26 }
 0x142   :  { %v475_v27 = vpop.f32.mrf.mxu1 }
 0x143   :  { %v476_v28 = vadd.f32 %v706_v23, %v475_v27 }
 0x145   :  { %v708_v29 = vpop.eup %707  ;;  %v479_v30 = vmul.f32 0.5, %v476_v28 }
 0x146   :  { %v482_v31 = vmul.f32 0.5, %v708_v29 }
 0x147   :  { %709 = vtanh.f32 %v479_v30 }
 0x148   :  { %v484_v32 = vadd.f32 0.5, %v482_v31 }
 0x14a   :  { %486 = vst [vmem:[%s920_s5] sm:$0xff] %v484_v32 }
 0x14d   :  { %v710_v33 = vpop.eup %709 }
 0x14e   :  { %v483_v34 = vmul.f32 0.5, %v710_v33 }
 0x150   :  { %v485_v35 = vadd.f32 0.5, %v483_v34 }
 0x152   :  { %487 = vst [vmem:[%s920_s5 + $0x8] sm:$0xff] %v485_v35 }

</bundles_post_ra>
